<compile_context>
chip_gen: v7x
topology: tpu7x:2x2x1
jax: 0.10.0
libtpu: 0.0.40
codegen_flags: <defaults>
</compile_context>

<pallas_src>
import jax
import jax.numpy as jnp
from jax.experimental import pallas as pl
from jax.experimental.pallas import tpu as pltpu


def aggregate_kernel(va_ref, vb_ref, w1a_ref, w1b_ref, b1_ref,
                     w2_ref, b2_ref, w3_ref, b3_ref, out_ref, acc_ref):
    k = pl.program_id(1)

    @pl.when(k == 0)
    def _init():
        acc_ref[...] = jnp.zeros_like(acc_ref)

    # Seq-sum folded into the first matmul: the lane-dense (tb, tk) tile of the
    # flattened activations hits the MXU against the S-replicated W1 slices.
    acc_ref[...] += (
        jnp.dot(va_ref[...], w1a_ref[...], preferred_element_type=jnp.float32)
        + jnp.dot(vb_ref[...], w1b_ref[...], preferred_element_type=jnp.float32))

    @pl.when(k == pl.num_programs(1) - 1)
    def _finalize():
        h1 = jnp.maximum(acc_ref[...] + b1_ref[...], 0.0)
        h2 = jnp.maximum(
            jnp.dot(h1, w2_ref[...], preferred_element_type=jnp.float32) + b2_ref[...],
            0.0)
        out_ref[...] = (
            jnp.dot(h2, w3_ref[...], preferred_element_type=jnp.float32) + b3_ref[...]
        ).astype(out_ref.dtype)


def _vmem_budgets():
    """(input-streaming budget, vmem_limit_bytes) sized per TPU generation."""
    try:
        cap = pltpu.get_tpu_info().vmem_capacity_bytes
    except Exception:
        cap = 64 * 1024 * 1024                      # assume the smallest (v7x-like) part
    if cap >= 96 * 1024 * 1024:                     # v5e / v6e: 128 MiB physical VMEM
        return 88 * 1024 * 1024, 104 * 1024 * 1024
    return 24 * 1024 * 1024, 48 * 1024 * 1024       # v7x: 64 MiB physical VMEM


def _pick_tk(K, cap=2048):
    """Largest 128-multiple divisor of K <= cap.  Exact coverage of K keeps padded
    garbage out of the reduction; 128-alignment keeps blocks lane-dense."""
    if K <= cap:
        return K
    if K % 128 == 0:
        t = (cap // 128) * 128
        while t >= 128:
            if K % t == 0:
                return t
            t -= 128
    return K


def aggregate_forward(V_A, V_B, params, *, tb=None, tk=None):
    W1, b1, W2, b2, W3, b3 = params
    B, S, H = V_A.shape
    Hh = W1.shape[1]
    num_outputs = W3.shape[1]
    assert W1.shape[0] == 2 * H
    K = S * H
    itemsize = V_A.dtype.itemsize

    # Lane-dense layout: flatten (B, S, H) -> (B, S*H) and fold the seq reduction
    # into the first matmul via S-replicated W1 slices (split W1 avoids any
    # lane-axis concatenate).
    va_flat = V_A.reshape(B, K)
    vb_flat = V_B.reshape(B, K)
    W1a_rep = jnp.tile(W1[:H], (S, 1))              # (S*H, Hh)
    W1b_rep = jnp.tile(W1[H:], (S, 1))              # (S*H, Hh)
    if V_A.dtype != jnp.float32:
        # Narrow-dtype activations (e.g. bf16 from upstream): keep the first-matmul
        # operands in the activation dtype; accumulation stays f32 on the MXU.
        W1a_rep = W1a_rep.astype(V_A.dtype)
        W1b_rep = W1b_rep.astype(V_A.dtype)
    # TODO(synk): for very large S*Hh, sum via a (S*H, H) block-ones matmul instead of
    # replicating W1, so weight HBM traffic stays independent of S.

    # Classifier padded to a multiple of 128 lanes -> unmasked (lane-dense) stores.
    n_pad = ((num_outputs + 127) // 128) * 128
    W3p = jnp.zeros((Hh, n_pad), W3.dtype).at[:, :num_outputs].set(W3)
    b3p = jnp.zeros((1, n_pad), b3.dtype).at[:, :num_outputs].set(b3)

    budget, vmem_limit = _vmem_budgets()

    if tk is None:
        tk = _pick_tk(K)
    nk = pl.cdiv(K, tk)

    if tb is None:
        # Double-buffered streamed inputs + double-buffered replicated-W1 reduction
        # blocks + resident MLP weights + output block + accumulator scratch.
        weight_bytes = 4 * (2 * 2 * tk * Hh
                            + 2 * (Hh * Hh + Hh * n_pad + 2 * Hh + n_pad))
        per_row = 2 * 2 * tk * itemsize + 2 * n_pad * 4 + Hh * 4
        tb = max(1, (budget - weight_bytes) // per_row)
        tb = min(tb, 512)
        # Megacore (v7x): keep >= 2 batch blocks so both TensorCores stream.
        if B > 8:
            tb = min(tb, max(8, ((pl.cdiv(B, 2) + 7) // 8) * 8))
    if tb >= B:
        tb = B                                      # single block covers the batch
    else:
        tb = max(8, (tb // 8) * 8)                  # keep the out-block sublane dim 8-aligned
    nb = pl.cdiv(B, tb)

    const2d = lambda i, k: (0, 0)
    cost = pl.CostEstimate(
        flops=2 * B * (2 * K * Hh + Hh * Hh + Hh * n_pad),
        transcendentals=0,
        bytes_accessed=int(2 * B * K * itemsize + B * n_pad * 4
                           + nb * 2 * K * Hh * 4
                           + (Hh * Hh + Hh * n_pad + 2 * Hh + n_pad) * 4),
    )

    out_padded = pl.pallas_call(
        aggregate_kernel,
        out_shape=jax.ShapeDtypeStruct((B, n_pad), jnp.float32),
        grid=(nb, nk),
        in_specs=[
            pl.BlockSpec((tb, tk), lambda i, k: (i, k)),   # V_A flat tile (streamed)
            pl.BlockSpec((tb, tk), lambda i, k: (i, k)),   # V_B flat tile (streamed)
            pl.BlockSpec((tk, Hh), lambda i, k: (k, 0)),   # tile(W1[:H]) reduction slice
            pl.BlockSpec((tk, Hh), lambda i, k: (k, 0)),   # tile(W1[H:]) reduction slice
            pl.BlockSpec((1, Hh), const2d),                # b1  (resident)
            pl.BlockSpec((Hh, Hh), const2d),               # W2  (resident)
            pl.BlockSpec((1, Hh), const2d),                # b2  (resident)
            pl.BlockSpec((Hh, n_pad), const2d),            # W3  (zero-padded to 128k lanes)
            pl.BlockSpec((1, n_pad), const2d),             # b3  (zero-padded)
        ],
        out_specs=pl.BlockSpec((tb, n_pad), lambda i, k: (i, 0)),
        scratch_shapes=[pltpu.VMEM((tb, Hh), jnp.float32)],   # pre-activation accumulator
        compiler_params=pltpu.CompilerParams(
            dimension_semantics=("parallel", "arbitrary"),
            vmem_limit_bytes=vmem_limit,
        ),
        cost_estimate=cost,
    )(va_flat, vb_flat, W1a_rep, W1b_rep, b1, W2, b2, W3p, b3p)

    return out_padded[:, :num_outputs]


def reference_forward(V_A, V_B, params):
    W1, b1, W2, b2, W3, b3 = params
    x = jnp.concatenate([V_A.sum(axis=1), V_B.sum(axis=1)], axis=1)
    h1 = jnp.maximum(x @ W1 + b1, 0.0)
    h2 = jnp.maximum(h1 @ W2 + b2, 0.0)
    return h2 @ W3 + b3


def init_params(key, num_inputs, num_hiddens, num_outputs):
    """Deterministic parameter init matching nn.Linear shapes.
    Stored transposed: W has shape (in, out)."""
    ks = jax.random.split(key, 6)

    def lin(kw, kb, fan_in, fan_out):
        bound = 1.0 / jnp.sqrt(fan_in)
        W = jax.random.uniform(kw, (fan_in, fan_out), jnp.float32, -bound, bound)
        b = jax.random.uniform(kb, (1, fan_out), jnp.float32, -bound, bound)
        return W, b

    W1, b1 = lin(ks[0], ks[1], num_inputs, num_hiddens)
    W2, b2 = lin(ks[2], ks[3], num_hiddens, num_hiddens)
    W3, b3 = lin(ks[4], ks[5], num_hiddens, num_outputs)
    return (W1, b1, W2, b2, W3, b3)


if __name__ == "__main__":
    # Small shapes consistent with the module:
    #   V_A, V_B : (batch, seq, hidden) outputs of Compare
    #   Aggregate(num_inputs=2*hidden, num_hiddens, num_outputs=3)
    batch, seq, hidden = 2, 8, 32
    num_hiddens, num_outputs = 32, 3

    key = jax.random.PRNGKey(0)
    k_va, k_vb, k_p = jax.random.split(key, 3)
    V_A = jax.random.normal(k_va, (batch, seq, hidden), jnp.float32)
    V_B = jax.random.normal(k_vb, (batch, seq, hidden), jnp.float32)
    params = init_params(k_p, 2 * hidden, num_hiddens, num_outputs)

    # NOTE: Dropout(0.2) layers are identity in eval mode; no stochastic path here.
    y = aggregate_forward(V_A, V_B, params)
    y = jax.block_until_ready(y)

    y_ref = reference_forward(V_A, V_B, params)
    assert y.shape == (batch, num_outputs)
    assert jnp.allclose(y, y_ref, atol=1e-4, rtol=1e-4), "mismatch vs reference"

    print("KERNEL_OK")
</pallas_src>

<mosaic_0001>
module attributes {stable_mosaic.version = 11 : i64} {
  func.func @aggregate_kernel(%arg0: i32, %arg1: i32, %arg2: memref<2x256xf32, #tpu.memory_space<vmem>>, %arg3: memref<2x256xf32, #tpu.memory_space<vmem>>, %arg4: memref<256x32xf32, #tpu.memory_space<vmem>>, %arg5: memref<256x32xf32, #tpu.memory_space<vmem>>, %arg6: memref<1x32xf32, #tpu.memory_space<vmem>>, %arg7: memref<32x32xf32, #tpu.memory_space<vmem>>, %arg8: memref<1x32xf32, #tpu.memory_space<vmem>>, %arg9: memref<32x128xf32, #tpu.memory_space<vmem>>, %arg10: memref<1x128xf32, #tpu.memory_space<vmem>>, %arg11: memref<2x128xf32, #tpu.memory_space<vmem>>, %arg12: memref<2x32xf32, #tpu.memory_space<vmem>>) attributes {dimension_semantics = [#tpu.dimension_semantics<parallel>, #tpu.dimension_semantics<arbitrary>], iteration_bounds = array<i64: 1, 1>, scalar_prefetch = 0 : i64, scratch_operands = 1 : i64, tpu.core_type = #tpu.core_type<tc>, window_params = [{transform_indices = @transform_0, window_bounds = array<i64: 2, 256>}, {transform_indices = @transform_1, window_bounds = array<i64: 2, 256>}, {transform_indices = @transform_2, window_bounds = array<i64: 256, 32>}, {transform_indices = @transform_3, window_bounds = array<i64: 256, 32>}, {pipeline_mode = #tpu.pipeline_mode<synchronous>, transform_indices = @transform_4, window_bounds = array<i64: 1, 32>}, {pipeline_mode = #tpu.pipeline_mode<synchronous>, transform_indices = @transform_5, window_bounds = array<i64: 32, 32>}, {pipeline_mode = #tpu.pipeline_mode<synchronous>, transform_indices = @transform_6, window_bounds = array<i64: 1, 32>}, {pipeline_mode = #tpu.pipeline_mode<synchronous>, transform_indices = @transform_7, window_bounds = array<i64: 32, 128>}, {pipeline_mode = #tpu.pipeline_mode<synchronous>, transform_indices = @transform_8, window_bounds = array<i64: 1, 128>}, {transform_indices = @transform_9, window_bounds = array<i64: 2, 128>}]} {
    %c0_i32 = arith.constant 0 : i32
    %0 = arith.cmpi eq, %arg1, %c0_i32 : i32
    %1 = arith.extui %0 : i1 to i32
    %c0_i32_0 = arith.constant 0 : i32
    %2 = arith.cmpi ne, %1, %c0_i32_0 : i32
    scf.if %2 {
      %cst_15 = arith.constant 0.000000e+00 : f32
      %16 = vector.broadcast %cst_15 : f32 to vector<2x32xf32>
      %c0_16 = arith.constant 0 : index
      %c0_17 = arith.constant 0 : index
      %17 = vector.load %arg12[%c0_16, %c0_17] : memref<2x32xf32, #tpu.memory_space<vmem>>, vector<2x32xf32>
      tpu.vector_store %arg12[%c0_16, %c0_17], %16 {strides = array<i32>} : memref<2x32xf32, #tpu.memory_space<vmem>>, vector<2x32xf32>,
    } else {
    }
    %c0 = arith.constant 0 : index
    %c0_1 = arith.constant 0 : index
    %3 = vector.load %arg12[%c0, %c0_1] : memref<2x32xf32, #tpu.memory_space<vmem>>, vector<2x32xf32>
    %c0_2 = arith.constant 0 : index
    %c0_3 = arith.constant 0 : index
    %4 = vector.load %arg2[%c0_2, %c0_3] : memref<2x256xf32, #tpu.memory_space<vmem>>, vector<2x256xf32>
    %c0_4 = arith.constant 0 : index
    %c0_5 = arith.constant 0 : index
    %5 = vector.load %arg4[%c0_4, %c0_5] : memref<256x32xf32, #tpu.memory_space<vmem>>, vector<256x32xf32>
    %cst = arith.constant dense<0.000000e+00> : vector<2x32xf32>
    %6 = tpu.matmul %4, %5, %cst {dimension_numbers = #tpu.dot_dimension_numbers<[1], [0], [0], [1], [0, 0, 1, 1], [], []>} : vector<2x256xf32>, vector<256x32xf32>, vector<2x32xf32> -> vector<2x32xf32>
    %c0_6 = arith.constant 0 : index
    %c0_7 = arith.constant 0 : index
    %7 = vector.load %arg3[%c0_6, %c0_7] : memref<2x256xf32, #tpu.memory_space<vmem>>, vector<2x256xf32>
    %c0_8 = arith.constant 0 : index
    %c0_9 = arith.constant 0 : index
    %8 = vector.load %arg5[%c0_8, %c0_9] : memref<256x32xf32, #tpu.memory_space<vmem>>, vector<256x32xf32>
    %cst_10 = arith.constant dense<0.000000e+00> : vector<2x32xf32>
    %9 = tpu.matmul %7, %8, %cst_10 {dimension_numbers = #tpu.dot_dimension_numbers<[1], [0], [0], [1], [0, 0, 1, 1], [], []>} : vector<2x256xf32>, vector<256x32xf32>, vector<2x32xf32> -> vector<2x32xf32>
    %10 = arith.addf %6, %9 : vector<2x32xf32>
    %11 = arith.addf %3, %10 : vector<2x32xf32>
    %c0_11 = arith.constant 0 : index
    %c0_12 = arith.constant 0 : index
    %12 = vector.load %arg12[%c0_11, %c0_12] : memref<2x32xf32, #tpu.memory_space<vmem>>, vector<2x32xf32>
    tpu.vector_store %arg12[%c0_11, %c0_12], %11 {strides = array<i32>} : memref<2x32xf32, #tpu.memory_space<vmem>>, vector<2x32xf32>,
    %c0_i32_13 = arith.constant 0 : i32
    %13 = arith.cmpi eq, %arg1, %c0_i32_13 : i32
    %14 = arith.extui %13 : i1 to i32
    %c0_i32_14 = arith.constant 0 : i32
    %15 = arith.cmpi ne, %14, %c0_i32_14 : i32
    scf.if %15 {
      %c0_15 = arith.constant 0 : index
      %c0_16 = arith.constant 0 : index
      %16 = vector.load %arg12[%c0_15, %c0_16] : memref<2x32xf32, #tpu.memory_space<vmem>>, vector<2x32xf32>
      %c0_17 = arith.constant 0 : index
      %c0_18 = arith.constant 0 : index
      %17 = vector.load %arg6[%c0_17, %c0_18] : memref<1x32xf32, #tpu.memory_space<vmem>>, vector<1x32xf32>
      %18 = vector.broadcast %17 : vector<1x32xf32> to vector<2x32xf32>
      %19 = arith.addf %16, %18 : vector<2x32xf32>
      %cst_19 = arith.constant 0.000000e+00 : f32
      %20 = vector.broadcast %cst_19 : f32 to vector<2x32xf32>
      %21 = arith.maximumf %19, %20 : vector<2x32xf32>
      %c0_20 = arith.constant 0 : index
      %c0_21 = arith.constant 0 : index
      %22 = vector.load %arg7[%c0_20, %c0_21] : memref<32x32xf32, #tpu.memory_space<vmem>>, vector<32x32xf32>
      %cst_22 = arith.constant dense<0.000000e+00> : vector<2x32xf32>
      %23 = tpu.matmul %21, %22, %cst_22 {dimension_numbers = #tpu.dot_dimension_numbers<[1], [0], [0], [1], [0, 0, 1, 1], [], []>} : vector<2x32xf32>, vector<32x32xf32>, vector<2x32xf32> -> vector<2x32xf32>
      %c0_23 = arith.constant 0 : index
      %c0_24 = arith.constant 0 : index
      %24 = vector.load %arg8[%c0_23, %c0_24] : memref<1x32xf32, #tpu.memory_space<vmem>>, vector<1x32xf32>
      %25 = vector.broadcast %24 : vector<1x32xf32> to vector<2x32xf32>
      %26 = arith.addf %23, %25 : vector<2x32xf32>
      %cst_25 = arith.constant 0.000000e+00 : f32
      %27 = vector.broadcast %cst_25 : f32 to vector<2x32xf32>
      %28 = arith.maximumf %26, %27 : vector<2x32xf32>
      %c0_26 = arith.constant 0 : index
      %c0_27 = arith.constant 0 : index
      %29 = vector.load %arg9[%c0_26, %c0_27] : memref<32x128xf32, #tpu.memory_space<vmem>>, vector<32x128xf32>
      %cst_28 = arith.constant dense<0.000000e+00> : vector<2x128xf32>
      %30 = tpu.matmul %28, %29, %cst_28 {dimension_numbers = #tpu.dot_dimension_numbers<[1], [0], [0], [1], [0, 0, 1, 1], [], []>} : vector<2x32xf32>, vector<32x128xf32>, vector<2x128xf32> -> vector<2x128xf32>
      %c0_29 = arith.constant 0 : index
      %c0_30 = arith.constant 0 : index
      %31 = vector.load %arg10[%c0_29, %c0_30] : memref<1x128xf32, #tpu.memory_space<vmem>>, vector<1x128xf32>
      %32 = vector.broadcast %31 : vector<1x128xf32> to vector<2x128xf32>
      %33 = arith.addf %30, %32 : vector<2x128xf32>
      %c0_31 = arith.constant 0 : index
      %c0_32 = arith.constant 0 : index
      %34 = vector.load %arg11[%c0_31, %c0_32] : memref<2x128xf32, #tpu.memory_space<vmem>>, vector<2x128xf32>
      tpu.vector_store %arg11[%c0_31, %c0_32], %33 {strides = array<i32>} : memref<2x128xf32, #tpu.memory_space<vmem>>, vector<2x128xf32>,
    } else {
    }
    return
  }
  func.func @transform_0(%arg0: i32, %arg1: i32) -> (i32, i32) {
    %c0_i32 = arith.constant 0 : i32
    return %arg0, %arg1 : i32, i32
  }
  func.func @transform_1(%arg0: i32, %arg1: i32) -> (i32, i32) {
    %c0_i32 = arith.constant 0 : i32
    return %arg0, %arg1 : i32, i32
  }
  func.func @transform_2(%arg0: i32, %arg1: i32) -> (i32, i32) {
    %c0_i32 = arith.constant 0 : i32
    %c0_i32_0 = arith.constant 0 : i32
    return %arg1, %c0_i32 : i32, i32
  }
  func.func @transform_3(%arg0: i32, %arg1: i32) -> (i32, i32) {
    %c0_i32 = arith.constant 0 : i32
    %c0_i32_0 = arith.constant 0 : i32
    return %arg1, %c0_i32 : i32, i32
  }
  func.func @transform_4(%arg0: i32, %arg1: i32) -> (i32, i32) {
    %c0_i32 = arith.constant 0 : i32
    %c0_i32_0 = arith.constant 0 : i32
    %c0_i32_1 = arith.constant 0 : i32
    return %c0_i32, %c0_i32_0 : i32, i32
  }
  func.func @transform_5(%arg0: i32, %arg1: i32) -> (i32, i32) {
    %c0_i32 = arith.constant 0 : i32
    %c0_i32_0 = arith.constant 0 : i32
    %c0_i32_1 = arith.constant 0 : i32
    return %c0_i32, %c0_i32_0 : i32, i32
  }
  func.func @transform_6(%arg0: i32, %arg1: i32) -> (i32, i32) {
    %c0_i32 = arith.constant 0 : i32
    %c0_i32_0 = arith.constant 0 : i32
    %c0_i32_1 = arith.constant 0 : i32
    return %c0_i32, %c0_i32_0 : i32, i32
  }
  func.func @transform_7(%arg0: i32, %arg1: i32) -> (i32, i32) {
    %c0_i32 = arith.constant 0 : i32
    %c0_i32_0 = arith.constant 0 : i32
    %c0_i32_1 = arith.constant 0 : i32
    return %c0_i32, %c0_i32_0 : i32, i32
  }
  func.func @transform_8(%arg0: i32, %arg1: i32) -> (i32, i32) {
    %c0_i32 = arith.constant 0 : i32
    %c0_i32_0 = arith.constant 0 : i32
    %c0_i32_1 = arith.constant 0 : i32
    return %c0_i32, %c0_i32_0 : i32, i32
  }
  func.func @transform_9(%arg0: i32, %arg1: i32) -> (i32, i32) {
    %c0_i32 = arith.constant 0 : i32
    %c0_i32_0 = arith.constant 0 : i32
    return %arg0, %c0_i32 : i32, i32
  }
}

</mosaic_0001>

<bundles_post_ra>
// kernel: tpu_custom_call.1
= control target key start
LH: loop header
LB: loop body
LE: loop exit
PB: predicated region body
PF: predicated region fallthrough
CT: control target
= control target key end

     0   :  { %s981_s0 = inlined_call_operand.vmem [shape: f32[2,256], index: 0, kind: input, shape index: {}]   ;;  %s982_s1 = inlined_call_operand.vmem [shape: f32[2,256], index: 1, kind: input, shape index: {}]   ;;  %s983_s2 = inlined_call_operand.vmem [shape: f32[256,32], index: 2, kind: input, shape index: {}]   ;;  %s984_s3 = inlined_call_operand.vmem [shape: f32[256,32], index: 3, kind: input, shape index: {}]   ;;  %s985_s4 = inlined_call_operand.vmem [shape: f32[1,32], index: 4, kind: input, shape index: {}]   ;;  %s986_s5 = inlined_call_operand.vmem [shape: f32[32,32], index: 5, kind: input, shape index: {}]   ;;  %s987_s6 = inlined_call_operand.vmem [shape: f32[1,32], index: 6, kind: input, shape index: {}]   ;;  %s988_s7 = inlined_call_operand.vmem [shape: f32[32,128], index: 7, kind: input, shape index: {}]   ;;  %s989_s8 = inlined_call_operand.vmem [shape: f32[1,128], index: 8, kind: input, shape index: {}]   ;;  %s990_s9 = inlined_call_operand.hbm [shape: f32[2,128], index: 9, kind: output, shape index: {}]  }
   0x1   :  { %v90_v0 = vld [vmem:[%s984_s3 + $0x80] sm:$0xff]  ;;  %v91_v1 = vld [vmem:[%s984_s3 + $0x88] sm:$0xff]  ;;  %v92_v11 = vld [vmem:[%s984_s3 + $0x90] sm:$0xff] }
   0x2   :  { %v57_v2 = vld [vmem:[%s983_s2 + $0x80] sm:$0xff]  ;;  %v578_v3 = vpack.c.bf16 %v91_v1, %v90_v0  ;;  %v58_v4 = vld [vmem:[%s983_s2 + $0x88] sm:$0xff]  ;;  %v93_v13 = vld [vmem:[%s984_s3 + $0x98] sm:$0xff] }
   0x3   :  { %v74_v5 = vld [vmem:[%s984_s3] sm:$0xff]  ;;  %v75_v6 = vld [vmem:[%s984_s3 + $0x8] sm:$0xff]  ;;  %v610_v7 = vpack.c.bf16 %v58_v4, %v57_v2  ;;  %v59_v14 = vld [vmem:[%s983_s2 + $0x90] sm:$0xff]  ;;  %v582_v16 = vpack.c.bf16 %v93_v13, %v92_v11 }
   0x4   :  { %v580_v8 = vpack.c.bf16 %v75_v6, %v74_v5  ;;  %v41_v9 = vld [vmem:[%s983_s2] sm:$0xff]  ;;  %v42_v10 = vld [vmem:[%s983_s2 + $0x8] sm:$0xff]  ;;  %579 = vmatprep.subr.bf16.mxu0 %v578_v3  ;;  %v60_v15 = vld [vmem:[%s983_s2 + $0x98] sm:$0xff] }
   0x5   :  { %v612_v12 = vpack.c.bf16 %v42_v10, %v41_v9  ;;  %611 = vmatprep.subr.bf16.mxu1 %v610_v7  ;;  %v614_v17 = vpack.c.bf16 %v60_v15, %v59_v14  ;;  %v76_v18 = vld [vmem:[%s984_s3 + $0x10] sm:$0xff]  ;;  %v77_v19 = vld [vmem:[%s984_s3 + $0x18] sm:$0xff]  ;;  %v94_v23 = vld [vmem:[%s984_s3 + $0xa0] sm:$0xff] }
   0x6   :  { %581 = vmatpush3.bf16.msra.mxu0 %v580_v8  ;;  %v43_v20 = vld [vmem:[%s983_s2 + $0x10] sm:$0xff]  ;;  %v584_v21 = vpack.c.bf16 %v77_v19, %v76_v18  ;;  %v44_v22 = vld [vmem:[%s983_s2 + $0x18] sm:$0xff]  ;;  %v95_v24 = vld [vmem:[%s984_s3 + $0xa8] sm:$0xff] }
   0x7   :  { %613 = vmatpush3.bf16.msra.mxu1 %v612_v12  ;;  %583 = vmatprep.subr.bf16.mxu0 %v582_v16  ;;  %v616_v25 = vpack.c.bf16 %v44_v22, %v43_v20  ;;  %v586_v26 = vpack.c.bf16 %v95_v24, %v94_v23  ;;  %v61_v27 = vld [vmem:[%s983_s2 + $0xa0] sm:$0xff]  ;;  %v62_v28 = vld [vmem:[%s983_s2 + $0xa8] sm:$0xff]  ;;  %v96_v35 = vld [vmem:[%s984_s3 + $0xb0] sm:$0xff] }
   0x8   :  { %615 = vmatprep.subr.bf16.mxu1 %v614_v17  ;;  %v78_v29 = vld [vmem:[%s984_s3 + $0x20] sm:$0xff]  ;;  %v618_v30 = vpack.c.bf16 %v62_v28, %v61_v27  ;;  %v79_v31 = vld [vmem:[%s984_s3 + $0x28] sm:$0xff]  ;;  %v97_v36 = vld [vmem:[%s984_s3 + $0xb8] sm:$0xff] }
   0x9   :  { %v45_v32 = vld [vmem:[%s983_s2 + $0x20] sm:$0xff]  ;;  %v46_v33 = vld [vmem:[%s983_s2 + $0x28] sm:$0xff]  ;;  %v588_v34 = vpack.c.bf16 %v79_v31, %v78_v29  ;;  %v63_v37 = vld [vmem:[%s983_s2 + $0xb0] sm:$0xff]  ;;  %v590_v39 = vpack.c.bf16 %v97_v36, %v96_v35 }
   0xa   :  { %585 = vmatpush3.bf16.msra.mxu0 %v584_v21  ;;  %v620_v38 = vpack.c.bf16 %v46_v33, %v45_v32  ;;  %v64_v40 = vld [vmem:[%s983_s2 + $0xb8] sm:$0xff]  ;;  %v80_v41 = vld [vmem:[%s984_s3 + $0x30] sm:$0xff]  ;;  %v98_v46 = vld [vmem:[%s984_s3 + $0xc0] sm:$0xff] }
   0xb   :  { %617 = vmatpush3.bf16.msra.mxu1 %v616_v25  ;;  %587 = vmatprep.subr.bf16.mxu0 %v586_v26  ;;  %v81_v42 = vld [vmem:[%s984_s3 + $0x38] sm:$0xff]  ;;  %v622_v43 = vpack.c.bf16 %v64_v40, %v63_v37  ;;  %v47_v44 = vld [vmem:[%s983_s2 + $0x30] sm:$0xff]  ;;  %v99_v47 = vld [vmem:[%s984_s3 + $0xc8] sm:$0xff] }
   0xc   :  { %619 = vmatprep.subr.bf16.mxu1 %v618_v30  ;;  %v48_v45 = vld [vmem:[%s983_s2 + $0x38] sm:$0xff]  ;;  %v65_v48 = vld [vmem:[%s983_s2 + $0xc0] sm:$0xff]  ;;  %v66_v49 = vld [vmem:[%s983_s2 + $0xc8] sm:$0xff]  ;;  %v592_v50 = vpack.c.bf16 %v81_v42, %v80_v41  ;;  %v594_v52 = vpack.c.bf16 %v99_v47, %v98_v46 }
   0xd   :  { %v624_v51 = vpack.c.bf16 %v48_v45, %v47_v44  ;;  %v82_v53 = vld [vmem:[%s984_s3 + $0x40] sm:$0xff]  ;;  %v83_v54 = vld [vmem:[%s984_s3 + $0x48] sm:$0xff]  ;;  %v626_v56 = vpack.c.bf16 %v66_v49, %v65_v48  ;;  %v100_v58 = vld [vmem:[%s984_s3 + $0xd0] sm:$0xff] }
   0xe   :  { %589 = vmatpush3.bf16.msra.mxu0 %v588_v34  ;;  %v49_v55 = vld [vmem:[%s983_s2 + $0x40] sm:$0xff]  ;;  %v50_v57 = vld [vmem:[%s983_s2 + $0x48] sm:$0xff]  ;;  %v101_v59 = vld [vmem:[%s984_s3 + $0xd8] sm:$0xff]  ;;  %v596_v62 = vpack.c.bf16 %v83_v54, %v82_v53 }
   0xf   :  { %621 = vmatpush3.bf16.msra.mxu1 %v620_v38  ;;  %591 = vmatprep.subr.bf16.mxu0 %v590_v39  ;;  %v67_v60 = vld [vmem:[%s983_s2 + $0xd0] sm:$0xff]  ;;  %v68_v61 = vld [vmem:[%s983_s2 + $0xd8] sm:$0xff]  ;;  %v628_v63 = vpack.c.bf16 %v50_v57, %v49_v55  ;;  %v598_v0 = vpack.c.bf16 %v101_v59, %v100_v58  ;;  %v102_v6 = vld [vmem:[%s984_s3 + $0xe0] sm:$0xff] }
  0x10   :  { %623 = vmatprep.subr.bf16.mxu1 %v622_v43  ;;  %v84_v1 = vld [vmem:[%s984_s3 + $0x50] sm:$0xff]  ;;  %v85_v2 = vld [vmem:[%s984_s3 + $0x58] sm:$0xff]  ;;  %v630_v4 = vpack.c.bf16 %v68_v61, %v67_v60  ;;  %v103_v7 = vld [vmem:[%s984_s3 + $0xe8] sm:$0xff] }
  0x11   :  { %v51_v3 = vld [vmem:[%s983_s2 + $0x50] sm:$0xff]  ;;  %v52_v5 = vld [vmem:[%s983_s2 + $0x58] sm:$0xff]  ;;  %v69_v8 = vld [vmem:[%s983_s2 + $0xe0] sm:$0xff]  ;;  %v600_v11 = vpack.c.bf16 %v85_v2, %v84_v1  ;;  %v602_v16 = vpack.c.bf16 %v103_v7, %v102_v6 }
  0x12   :  { %593 = vmatpush3.bf16.msra.mxu0 %v592_v50  ;;  %v70_v9 = vld [vmem:[%s983_s2 + $0xe8] sm:$0xff]  ;;  %v86_v10 = vld [vmem:[%s984_s3 + $0x60] sm:$0xff]  ;;  %v632_v15 = vpack.c.bf16 %v52_v5, %v51_v3  ;;  %v104_v17 = vld [vmem:[%s984_s3 + $0xf0] sm:$0xff] }
  0x13   :  { %625 = vmatpush3.bf16.msra.mxu1 %v624_v51  ;;  %595 = vmatprep.subr.bf16.mxu0 %v594_v52  ;;  %v87_v12 = vld [vmem:[%s984_s3 + $0x68] sm:$0xff]  ;;  %v53_v13 = vld [vmem:[%s983_s2 + $0x60] sm:$0xff]  ;;  %v105_v18 = vld [vmem:[%s984_s3 + $0xf8] sm:$0xff]  ;;  %v634_v20 = vpack.c.bf16 %v70_v9, %v69_v8 }
  0x14   :  { %627 = vmatprep.subr.bf16.mxu1 %v626_v56  ;;  %v54_v14 = vld [vmem:[%s983_s2 + $0x68] sm:$0xff]  ;;  %v469_v19 = vld.sshfl [vmem:[%s982_s1] sm:$0x33 pattern:$0x76325410] }
  0x15   :  { %v114_v21 = vcombine.high %v469_v19, %v469_v19  ;;  %v470_v22 = vld.sshfl [vmem:[%s981_s0] sm:$0x33 pattern:$0x76325410] }
  0x16   :  { %597 = vmatpush3.bf16.msra.mxu0 %v596_v62 }
  0x17   :  { %629 = vmatpush3.bf16.msra.mxu1 %v628_v63  ;;  %599 = vmatprep.subr.bf16.mxu0 %v598_v0 }
  0x18   :  { %631 = vmatprep.subr.bf16.mxu1 %v630_v4 }
  0x19   :  { %14 = vsyncpa [#allocation4], 0  ;;  %v71_v23 = vld [vmem:[%s983_s2 + $0xf0] sm:$0xff]  ;;  %v72_v24 = vld [vmem:[%s983_s2 + $0xf8] sm:$0xff]  ;;  %v195_v25 = vcombine.high %v470_v22, %v470_v22  ;;  %v604_v26 = vpack.c.bf16 %v87_v12, %v86_v10  ;;  %181 = vmatprep.mubr.f32.mxu0 %v114_v21  ;;  %v636_v27 = vpack.c.bf16 %v54_v14, %v53_v13  ;;  %v606_v28 = vpack.c.bf16 %v105_v18, %v104_v17  ;;  %s685_s29 = smov [#allocation3]  }
  0x1a   :  { %601 = vmatpush3.bf16.msra.mxu0 %v600_v11  ;;  %v88_v29 = vld [vmem:[%s984_s3 + $0x70] sm:$0xff]  ;;  %v89_v30 = vld [vmem:[%s984_s3 + $0x78] sm:$0xff]  ;;  %v638_v31 = vpack.c.bf16 %v72_v24, %v71_v23  ;;  %vm37_vm0 = vcmask 254976   ;;  %v682_v36 = vmov 0.0   ;;  %v284_v37 = vld [vmem:[%s986_s5] sm:$0xff]  ;;  %v683_v40 = vmov 0.0|0.0  }
  0x1b   :  { %633 = vmatpush3.bf16.msra.mxu1 %v632_v15  ;;  %603 = vmatprep.subr.bf16.mxu0 %v602_v16  ;;  %v55_v32 = vld [vmem:[%s983_s2 + $0x70] sm:$0xff]  ;;  %v56_v33 = vld [vmem:[%s983_s2 + $0x78] sm:$0xff]  ;;  %v608_v34 = vpack.c.bf16 %v89_v30, %v88_v29  ;;  %38 = vst.msk [vmem:[#allocation2] sm:$0x3] %vm37_vm0, %v682_v36  ;;  %v285_v38 = vld [vmem:[%s986_s5 + $0x8] sm:$0xff]  ;;  %vm684_vm1 = vmmov 0  }
  0x1c   :  { %635 = vmatprep.subr.bf16.mxu1 %v634_v20  ;;  %262 = vmatprep.mubr.f32.mxu1 %v195_v25  ;;  %v640_v35 = vpack.c.bf16 %v56_v33, %v55_v32  ;;  %v286_v39 = vld [vmem:[%s986_s5 + $0x10] sm:$0xff]  ;;  %v643_v41 = vpack.c.bf16 %v285_v38, %v284_v37  ;;  %v287_v42 = vld [vmem:[%s986_s5 + $0x18] sm:$0xff]  ;;  %v370_v44 = vld [vmem:[%s988_s7] sm:$0xff]  ;;  %vm295_vm2 = vcmask 261120   ;;  %s461_s30 = sshll.u32 %s685_s29, 4  ;;  %s462_s30 = int_to_ptr.vmem [resolvable:$true] %s461_s30 }
  0x1d   :  { %v646_v43 = vpack.c.bf16 %v287_v42, %v286_v39  ;;  %v371_v45 = vld [vmem:[%s988_s7 + $0x8] sm:$0xff]  ;;  %v471_v56 = vld [vmem:[%s985_s4] ss:$0 sm:$0xff]  ;;  %v372_v60 = vld [vmem:[%s988_s7 + $0x10] sm:$0xff]  ;;  %p663_p1 = scmp.lt.s32.totalorder %s462_s30, %s462_s30 }
  0x1e   :  { %605 = vmatpush3.bf16.msra.mxu0 %v604_v26  ;;  %v649_v46 = vpack.c.bf16 %v371_v45, %v370_v44  ;;  %v373_v61 = vld [vmem:[%s988_s7 + $0x18] sm:$0xff]  ;;  %v472_v63 = vld [vmem:[%s987_s6] ss:$0 sm:$0xff]  ;;  %s658_s7 = scalar_lea.vmem %s462_s30, 32 }
  0x1f   :  { %637 = vmatpush3.bf16.msra.mxu1 %v636_v27  ;;  %607 = vmatprep.subr.bf16.mxu0 %v606_v28  ;;  %v652_v62 = vpack.c.bf16 %v373_v61, %v372_v60  ;;  %v474_v4 = vld [vmem:[%s989_s8] ss:$0 sm:$0xff]  ;;  %p659_p0 = scmp.ne.s32.totalorder %s462_s30, %s658_s7  ;;  %p664_p2 = scmp.lt.s32.totalorder %s658_s7, %s658_s7 }
  0x20   :  { %639 = vmatprep.subr.bf16.mxu1 %v638_v31 }
  0x21   :  { %p665_p3 = por %p664_p2, %p663_p1 }
  0x22   :  { %609 = vmatpush3.bf16.msra.mxu0 %v608_v34  ;;  %v39_v53 = vld [vmem:[#allocation2] sm:$0x3] }
  0x23   :  { %641 = vmatpush3.bf16.msra.mxu1 %v640_v35  ;;  %642 = vmatprep.subr.bf16.mxu0 %v683_v40  ;;  %p666_p4 = pnand %p665_p3, %p659_p0 }
  0x24   :  { %648 = vmatprep.subr.bf16.mxu1 %v683_v40 }
  0x25   :  { %182 = vmatmul.mubr.f32.vlgmr.msra.gmra.mrb[0].mxu0 %v469_v19 }
  0x26   :  { %263 = vmatmul.mubr.f32.vlgmr.msra.gmra.mrb[0].mxu1 %v470_v22  ;;  %644 = vmatpush3.bf16.msra.mxu0 %v643_v41 }
  0x27   :  { %645 = vmatprep.subr.bf16.mxu0 %v683_v40  ;;  %564 = vmatprep.mubr.msk.f32.mxu0 %vm684_vm1, %v682_v36 }
  0x28   :  { %575 = vmatprep.mubr.msk.f32.mxu1 %vm684_vm1, %v682_v36  ;;  %650 = vmatpush3.bf16.msra.mxu1 %v649_v46 }
  0x29   :  { %651 = vmatprep.subr.bf16.mxu1 %v683_v40 }
  0x2a   :  { %647 = vmatpush3.bf16.msra.mxu0 %v646_v43 }
  0x2c   :  { %653 = vmatpush3.bf16.msra.mxu1 %v652_v62 }
  0xf8   :  { %v508_v47 = vpop.f32.mrb[0].mxu0 }
  0xf9   :  { %v543_v48 = vpop.f32.mrb[0].mxu1  ;;  %v509_v49 = vpop.f32.mrb[1].mxu0 }
  0xfa   :  { %v510_v50 = vadd.f32 %v509_v49, %v508_v47  ;;  %v544_v51 = vpop.f32.mrb[1].mxu1 }
  0xfb   :  { %v545_v52 = vadd.f32 %v544_v51, %v543_v48 }
  0xfd   :  { %v265_v54 = vadd.f32 %v545_v52, %v510_v50 }
  0xff   :  { %v268_v55 = vadd.f32 %v265_v54, %v39_v53 }
 0x101   :  { %270 = vst.msk [vmem:[#allocation2] sm:$0x3] %vm37_vm0, %v268_v55 }
 0x108   :  { %v274_v57 = vld [vmem:[#allocation2] sm:$0x3] }
 0x109   :  { %v282_v58 = vadd.f32 %v471_v56, %v274_v57 }
 0x10b   :  { %v283_v59 = vmax.f32 %v282_v58, 0.0 }
 0x10d   :  { %565 = vmatmul.mubr.msk.f32.vlgmr.msra.gmra.mrb[2].mxu0 %vm295_vm2, %v283_v59 }
 0x1e0   :  { %v365_v0 = vpop.f32.mrb[2].mxu0 }
 0x1e1   :  { %v366_v1 = vadd.f32 %v472_v63, %v365_v0  ;;  %v566_v2 = vpop.f32.mrb[3].mxu0 }
 0x1e3   :  { %v369_v3 = vmax.f32 %v366_v1, 0.0 }
 0x1e5   :  { %576 = vmatmul.mubr.msk.f32.vlgmr.msra.gmra.mrb[2].mxu1 %vm295_vm2, %v369_v3 }
 0x2b8   :  { %v450_v5 = vpop.f32.mrb[2].mxu1 }
 0x2b9   :  { %v451_v6 = vadd.f32 %v474_v4, %v450_v5  ;;  %v577_v7 = vpop.f32.mrb[3].mxu1 }
 0x2bb   :  { %454 = vst [vmem:[#allocation3] sm:$0x3] %v451_v6 }
 0x2bc   :  { %669 = shalt.err (!%p666_p4)
}
 0x2bd   :  { %s670_s11 = scalar_lea.hbm %s990_s9, 32 }
 0x2be   :  { %p671_p5 = scmp.ne.s32.totalorder %s990_s9, %s670_s11  ;;  %p674_p6 = scmp.lt.u32.totalorder %s670_s11, %s990_s9 }
 0x2c0   :  { %p676_p7 = pnand %p674_p6, %p671_p5 }
 0x2c2   :  { %679 = shalt.err (!%p676_p7)
}
 0x2c3   :  { %464 = dma.vmem_to_hbm [thread:$0]  %s462_s30, 32, %s990_s9, [#allocation4]  }
 0x2c4   :  { %680 = dma.done.wait [#allocation4], 32  }
 0x2c5   :  { %681 = vsyncadd [#allocation4], 4294967264 }
 0x2c6   :  { %468 = vsyncpa [#allocation4], 1 }

</bundles_post_ra>
